<compile_context>
chip_gen: v7x
topology: tpu7x:2x2x1
jax: 0.10.0
libtpu: 0.0.40
codegen_flags: <defaults>
</compile_context>

<pallas_src>
import functools

import jax
import jax.numpy as jnp
from jax.experimental import pallas as pl
from jax.experimental.pallas import tpu as pltpu

_LANE = 128          # TPU lane width
_SUBLANE = 8         # TPU sublane width (f32)
_H3 = 64             # width of the third hidden layer in the PyTorch module
_H3_PAD = _LANE      # padded to a full lane group (cheap, keeps h3 lane-dense)
_MAX_TILE_ROWS = 2048


def _round_up(x, m):
    return ((x + m - 1) // m) * m


def _pick_block_b(batch, n_in):
    """Batch-tile height.

    Large tiles (up to 2048 rows) amortize per-grid-step overhead; the tile
    count is forced to an even number >= 2 whenever possible so the 'parallel'
    grid axis balances across v7x's two TensorCores.  Also capped so the
    double-buffered f32 x tile stays under ~8 MiB of VMEM.
    """
    if batch <= 16:
        return 16
    rows_cap = (8 * 1024 * 1024) // (8 * max(n_in, 1))          # 2 bufs * 4 B
    rows_cap = max(_SUBLANE, (rows_cap // _SUBLANE) * _SUBLANE)
    rows_cap = min(rows_cap, _MAX_TILE_ROWS)
    n_tiles = max(2, pl.cdiv(batch, rows_cap))
    if n_tiles % 2:
        n_tiles += 1                                             # even grid
    return min(rows_cap, _round_up(pl.cdiv(batch, n_tiles), _SUBLANE))


def _vmem_limit_bytes(block_b, n_in, n_out):
    """Derive the scoped-VMEM limit from the actual footprint (+ headroom)."""
    io = 2 * block_b * n_in * 4 + 2 * block_b * n_out * 4        # dbl-buffered tiles
    w = (n_in * 256 + 256 * 128 + 128 * _H3_PAD + _H3_PAD * n_out) * 2  # bf16
    b = (256 + 128 + _H3_PAD + n_out) * 4                        # f32 biases
    act = block_b * (256 + 128 + _H3_PAD) * 6 + block_b * n_out * 4  # f32+bf16
    need = io + w + b + act
    return int(min(max(need * 3 // 2 + 8 * 1024 * 1024, 16 * 1024 * 1024),
                   48 * 1024 * 1024))


def _mlp_kernel(x_ref,
                w1_ref, b1_ref,
                w2_ref, b2_ref,
                w3_ref, b3_ref,
                w4_ref, b4_ref,
                o_ref):
    """Fused 4-layer MLP forward for one batch tile.

    x arrives as f32 and is cast to bf16 in-kernel (cheap VPU op, hidden under
    the pipeline).  Matmuls use bf16 operands with f32 accumulation; bias-add
    and ReLU are f32, with bf16 casts only on values fed to the next dot.
    """
    x = x_ref[...].astype(jnp.bfloat16)                          # (bm, n_in)

    h = jnp.dot(x, w1_ref[...], preferred_element_type=jnp.float32) + b1_ref[...]
    h = jnp.maximum(h, 0.0).astype(jnp.bfloat16)

    h = jnp.dot(h, w2_ref[...], preferred_element_type=jnp.float32) + b2_ref[...]
    h = jnp.maximum(h, 0.0).astype(jnp.bfloat16)

    h = jnp.dot(h, w3_ref[...], preferred_element_type=jnp.float32) + b3_ref[...]
    h = jnp.maximum(h, 0.0).astype(jnp.bfloat16)

    h = jnp.dot(h, w4_ref[...], preferred_element_type=jnp.float32) + b4_ref[...]

    o_ref[...] = h.astype(o_ref.dtype)                           # (bm, n_out) f32


@functools.partial(jax.jit, static_argnames=("block_b",))
def logistic_regression_forward(x, params, block_b=None):
    """x: (B, n_inputs) f32.  params: dict of transposed f32 weights + 2D biases."""
    B, n_in = x.shape
    n_out = params["w4"].shape[1]

    if block_b is None:
        block_b = _pick_block_b(B, n_in)

    # ---- parameter prep (tiny one-off XLA pass): bf16 weights, pad only the
    #      64-wide hidden dim to 128 lanes.  Output dim stays unpadded. ----
    w1 = params["w1"].astype(jnp.bfloat16)                               # (n_in, 256)
    w2 = params["w2"].astype(jnp.bfloat16)                               # (256, 128)
    w3 = jnp.pad(params["w3"], ((0, 0), (0, _H3_PAD - _H3))).astype(jnp.bfloat16)
    w4 = jnp.pad(params["w4"], ((0, _H3_PAD - _H3), (0, 0))).astype(jnp.bfloat16)
    b1 = params["b1"].astype(jnp.float32)
    b2 = params["b2"].astype(jnp.float32)
    b3 = jnp.pad(params["b3"], ((0, 0), (0, _H3_PAD - _H3))).astype(jnp.float32)
    b4 = params["b4"].astype(jnp.float32)                                # (1, n_out)

    # ---- x goes in as f32 (cast to bf16 inside the kernel); pad rows only
    #      when the batch is ragged w.r.t. the tile. ----
    B_pad = _round_up(B, block_b)
    x_p = x if B_pad == B else jnp.pad(x, ((0, B_pad - B), (0, 0)))

    grid = (B_pad // block_b,)

    def weight_spec(shape):
        # Grid-invariant operand: single resident VMEM copy, no double
        # buffering, no per-step re-DMA (constant index_map).
        return pl.BlockSpec(shape, lambda i: (0, 0),
                            pipeline_mode=pl.Buffered(1))

    out = pl.pallas_call(
        _mlp_kernel,
        out_shape=jax.ShapeDtypeStruct((B_pad, n_out), jnp.float32),
        grid_spec=pltpu.PrefetchScalarGridSpec(
            num_scalar_prefetch=0,
            grid=grid,
            in_specs=[
                pl.BlockSpec((block_b, n_in), lambda i: (i, 0)),   # x batch tile
                weight_spec(w1.shape), weight_spec(b1.shape),
                weight_spec(w2.shape), weight_spec(b2.shape),
                weight_spec(w3.shape), weight_spec(b3.shape),
                weight_spec(w4.shape), weight_spec(b4.shape),
            ],
            out_specs=pl.BlockSpec((block_b, n_out), lambda i: (i, 0)),
        ),
        compiler_params=pltpu.CompilerParams(
            dimension_semantics=("parallel",),
            vmem_limit_bytes=_vmem_limit_bytes(block_b, n_in, n_out),
        ),
    )(x_p, w1, b1, w2, b2, w3, b3, w4, b4)

    return out if B_pad == B else out[:B]


def init_params(key, n_inputs, n_outputs):
    """Deterministic init mimicking nn.Linear default (U[-1/sqrt(fan_in), ...]).

    Weights stored transposed relative to PyTorch: (in_features, out_features).
    Biases are (1, out_features) for in-kernel broadcasting.
    """
    dims = [n_inputs, 256, 128, 64, n_outputs]
    params = {}
    for li in range(4):
        fan_in, fan_out = dims[li], dims[li + 1]
        key, kw, kb = jax.random.split(key, 3)
        bound = 1.0 / jnp.sqrt(jnp.float32(fan_in))
        params[f"w{li + 1}"] = jax.random.uniform(
            kw, (fan_in, fan_out), jnp.float32, -bound, bound)
        params[f"b{li + 1}"] = jax.random.uniform(
            kb, (1, fan_out), jnp.float32, -bound, bound)
    return params


def reference_forward_f32(x, params):
    """Pure f32 reference (matches the PyTorch module's math; raw logits)."""
    h = jnp.maximum(x @ params["w1"] + params["b1"], 0.0)
    h = jnp.maximum(h @ params["w2"] + params["b2"], 0.0)
    h = jnp.maximum(h @ params["w3"] + params["b3"], 0.0)
    return h @ params["w4"] + params["b4"]


def reference_forward_bf16(x, params):
    """Reference with the kernel's numerics: bf16 operands, f32 accumulation."""
    def layer(h, w, b, relu):
        h = jnp.dot(h.astype(jnp.bfloat16), w.astype(jnp.bfloat16),
                    preferred_element_type=jnp.float32) + b
        return jnp.maximum(h, 0.0) if relu else h
    h = layer(x, params["w1"], params["b1"], True)
    h = layer(h, params["w2"], params["b2"], True)
    h = layer(h, params["w3"], params["b3"], True)
    return layer(h, params["w4"], params["b4"], False)


if __name__ == "__main__":
    key = jax.random.PRNGKey(0)
    n_inputs, n_outputs, batch = 32, 16, 16

    key, kx = jax.random.split(key)
    x = jax.random.normal(kx, (batch, n_inputs), jnp.float32)
    params = init_params(key, n_inputs, n_outputs)

    out = logistic_regression_forward(x, params)
    out = jax.block_until_ready(out)
    assert out.shape == (batch, n_outputs)
    assert out.dtype == jnp.float32

    # Tight check against a reference with identical (bf16-operand) numerics.
    ref_bf16 = reference_forward_bf16(x, params)
    assert jnp.allclose(out, ref_bf16, atol=2e-3, rtol=2e-3), \
        "mismatch vs bf16-consistent reference"

    # Looser check against the full-f32 PyTorch-equivalent math.
    # TODO(synk): for bit-level parity with the f32 PyTorch module, add a
    # pure-f32 MXU variant (bf16 operands are a deliberate perf tradeoff).
    ref_f32 = reference_forward_f32(x, params)
    assert jnp.allclose(out, ref_f32, atol=2e-2, rtol=2e-2), \
        "mismatch vs f32 reference"

    print("KERNEL_OK")
</pallas_src>

<mosaic_0001>
module attributes {stable_mosaic.version = 11 : i64} {
  func.func @_mlp_kernel(%arg0: i32, %arg1: memref<16x32xf32, #tpu.memory_space<vmem>>, %arg2: memref<32x256xbf16, #tpu.memory_space<vmem>>, %arg3: memref<1x256xf32, #tpu.memory_space<vmem>>, %arg4: memref<256x128xbf16, #tpu.memory_space<vmem>>, %arg5: memref<1x128xf32, #tpu.memory_space<vmem>>, %arg6: memref<128x128xbf16, #tpu.memory_space<vmem>>, %arg7: memref<1x128xf32, #tpu.memory_space<vmem>>, %arg8: memref<128x16xbf16, #tpu.memory_space<vmem>>, %arg9: memref<1x16xf32, #tpu.memory_space<vmem>>, %arg10: memref<16x16xf32, #tpu.memory_space<vmem>>) attributes {dimension_semantics = [#tpu.dimension_semantics<parallel>], iteration_bounds = array<i64: 1>, scalar_prefetch = 0 : i64, scratch_operands = 0 : i64, tpu.core_type = #tpu.core_type<tc>, window_params = [{transform_indices = @transform_0, window_bounds = array<i64: 16, 32>}, {pipeline_mode = #tpu.pipeline_mode<synchronous>, transform_indices = @transform_1, window_bounds = array<i64: 32, 256>}, {pipeline_mode = #tpu.pipeline_mode<synchronous>, transform_indices = @transform_2, window_bounds = array<i64: 1, 256>}, {pipeline_mode = #tpu.pipeline_mode<synchronous>, transform_indices = @transform_3, window_bounds = array<i64: 256, 128>}, {pipeline_mode = #tpu.pipeline_mode<synchronous>, transform_indices = @transform_4, window_bounds = array<i64: 1, 128>}, {pipeline_mode = #tpu.pipeline_mode<synchronous>, transform_indices = @transform_5, window_bounds = array<i64: 128, 128>}, {pipeline_mode = #tpu.pipeline_mode<synchronous>, transform_indices = @transform_6, window_bounds = array<i64: 1, 128>}, {pipeline_mode = #tpu.pipeline_mode<synchronous>, transform_indices = @transform_7, window_bounds = array<i64: 128, 16>}, {pipeline_mode = #tpu.pipeline_mode<synchronous>, transform_indices = @transform_8, window_bounds = array<i64: 1, 16>}, {transform_indices = @transform_9, window_bounds = array<i64: 16, 16>}]} {
    %c0 = arith.constant 0 : index
    %c0_0 = arith.constant 0 : index
    %0 = vector.load %arg1[%c0, %c0_0] : memref<16x32xf32, #tpu.memory_space<vmem>>, vector<16x32xf32>
    %1 = arith.truncf %0 : vector<16x32xf32> to vector<16x32xbf16>
    %c0_1 = arith.constant 0 : index
    %c0_2 = arith.constant 0 : index
    %2 = vector.load %arg2[%c0_1, %c0_2] : memref<32x256xbf16, #tpu.memory_space<vmem>>, vector<32x256xbf16>
    %cst = arith.constant dense<0.000000e+00> : vector<16x256xf32>
    %3 = tpu.matmul %1, %2, %cst {dimension_numbers = #tpu.dot_dimension_numbers<[1], [0], [0], [1], [0, 0, 1, 1], [], []>} : vector<16x32xbf16>, vector<32x256xbf16>, vector<16x256xf32> -> vector<16x256xf32>
    %c0_3 = arith.constant 0 : index
    %c0_4 = arith.constant 0 : index
    %4 = vector.load %arg3[%c0_3, %c0_4] : memref<1x256xf32, #tpu.memory_space<vmem>>, vector<1x256xf32>
    %5 = vector.broadcast %4 : vector<1x256xf32> to vector<16x256xf32>
    %6 = arith.addf %3, %5 : vector<16x256xf32>
    %cst_5 = arith.constant 0.000000e+00 : f32
    %7 = vector.broadcast %cst_5 : f32 to vector<16x256xf32>
    %8 = arith.maximumf %6, %7 : vector<16x256xf32>
    %9 = arith.truncf %8 : vector<16x256xf32> to vector<16x256xbf16>
    %c0_6 = arith.constant 0 : index
    %c0_7 = arith.constant 0 : index
    %10 = vector.load %arg4[%c0_6, %c0_7] : memref<256x128xbf16, #tpu.memory_space<vmem>>, vector<256x128xbf16>
    %cst_8 = arith.constant dense<0.000000e+00> : vector<16x128xf32>
    %11 = tpu.matmul %9, %10, %cst_8 {dimension_numbers = #tpu.dot_dimension_numbers<[1], [0], [0], [1], [0, 0, 1, 1], [], []>} : vector<16x256xbf16>, vector<256x128xbf16>, vector<16x128xf32> -> vector<16x128xf32>
    %c0_9 = arith.constant 0 : index
    %c0_10 = arith.constant 0 : index
    %12 = vector.load %arg5[%c0_9, %c0_10] : memref<1x128xf32, #tpu.memory_space<vmem>>, vector<1x128xf32>
    %13 = vector.broadcast %12 : vector<1x128xf32> to vector<16x128xf32>
    %14 = arith.addf %11, %13 : vector<16x128xf32>
    %cst_11 = arith.constant 0.000000e+00 : f32
    %15 = vector.broadcast %cst_11 : f32 to vector<16x128xf32>
    %16 = arith.maximumf %14, %15 : vector<16x128xf32>
    %17 = arith.truncf %16 : vector<16x128xf32> to vector<16x128xbf16>
    %c0_12 = arith.constant 0 : index
    %c0_13 = arith.constant 0 : index
    %18 = vector.load %arg6[%c0_12, %c0_13] : memref<128x128xbf16, #tpu.memory_space<vmem>>, vector<128x128xbf16>
    %cst_14 = arith.constant dense<0.000000e+00> : vector<16x128xf32>
    %19 = tpu.matmul %17, %18, %cst_14 {dimension_numbers = #tpu.dot_dimension_numbers<[1], [0], [0], [1], [0, 0, 1, 1], [], []>} : vector<16x128xbf16>, vector<128x128xbf16>, vector<16x128xf32> -> vector<16x128xf32>
    %c0_15 = arith.constant 0 : index
    %c0_16 = arith.constant 0 : index
    %20 = vector.load %arg7[%c0_15, %c0_16] : memref<1x128xf32, #tpu.memory_space<vmem>>, vector<1x128xf32>
    %21 = vector.broadcast %20 : vector<1x128xf32> to vector<16x128xf32>
    %22 = arith.addf %19, %21 : vector<16x128xf32>
    %cst_17 = arith.constant 0.000000e+00 : f32
    %23 = vector.broadcast %cst_17 : f32 to vector<16x128xf32>
    %24 = arith.maximumf %22, %23 : vector<16x128xf32>
    %25 = arith.truncf %24 : vector<16x128xf32> to vector<16x128xbf16>
    %c0_18 = arith.constant 0 : index
    %c0_19 = arith.constant 0 : index
    %26 = vector.load %arg8[%c0_18, %c0_19] : memref<128x16xbf16, #tpu.memory_space<vmem>>, vector<128x16xbf16>
    %cst_20 = arith.constant dense<0.000000e+00> : vector<16x16xf32>
    %27 = tpu.matmul %25, %26, %cst_20 {dimension_numbers = #tpu.dot_dimension_numbers<[1], [0], [0], [1], [0, 0, 1, 1], [], []>} : vector<16x128xbf16>, vector<128x16xbf16>, vector<16x16xf32> -> vector<16x16xf32>
    %c0_21 = arith.constant 0 : index
    %c0_22 = arith.constant 0 : index
    %28 = vector.load %arg9[%c0_21, %c0_22] : memref<1x16xf32, #tpu.memory_space<vmem>>, vector<1x16xf32>
    %29 = vector.broadcast %28 : vector<1x16xf32> to vector<16x16xf32>
    %30 = arith.addf %27, %29 : vector<16x16xf32>
    %c0_23 = arith.constant 0 : index
    %c0_24 = arith.constant 0 : index
    %31 = vector.load %arg10[%c0_23, %c0_24] : memref<16x16xf32, #tpu.memory_space<vmem>>, vector<16x16xf32>
    tpu.vector_store %arg10[%c0_23, %c0_24], %30 {strides = array<i32>} : memref<16x16xf32, #tpu.memory_space<vmem>>, vector<16x16xf32>,
    return
  }
  func.func @transform_0(%arg0: i32) -> (i32, i32) {
    %c0_i32 = arith.constant 0 : i32
    %c0_i32_0 = arith.constant 0 : i32
    return %arg0, %c0_i32 : i32, i32
  }
  func.func @transform_1(%arg0: i32) -> (i32, i32) {
    %c0_i32 = arith.constant 0 : i32
    %c0_i32_0 = arith.constant 0 : i32
    %c0_i32_1 = arith.constant 0 : i32
    return %c0_i32, %c0_i32_0 : i32, i32
  }
  func.func @transform_2(%arg0: i32) -> (i32, i32) {
    %c0_i32 = arith.constant 0 : i32
    %c0_i32_0 = arith.constant 0 : i32
    %c0_i32_1 = arith.constant 0 : i32
    return %c0_i32, %c0_i32_0 : i32, i32
  }
  func.func @transform_3(%arg0: i32) -> (i32, i32) {
    %c0_i32 = arith.constant 0 : i32
    %c0_i32_0 = arith.constant 0 : i32
    %c0_i32_1 = arith.constant 0 : i32
    return %c0_i32, %c0_i32_0 : i32, i32
  }
  func.func @transform_4(%arg0: i32) -> (i32, i32) {
    %c0_i32 = arith.constant 0 : i32
    %c0_i32_0 = arith.constant 0 : i32
    %c0_i32_1 = arith.constant 0 : i32
    return %c0_i32, %c0_i32_0 : i32, i32
  }
  func.func @transform_5(%arg0: i32) -> (i32, i32) {
    %c0_i32 = arith.constant 0 : i32
    %c0_i32_0 = arith.constant 0 : i32
    %c0_i32_1 = arith.constant 0 : i32
    return %c0_i32, %c0_i32_0 : i32, i32
  }
  func.func @transform_6(%arg0: i32) -> (i32, i32) {
    %c0_i32 = arith.constant 0 : i32
    %c0_i32_0 = arith.constant 0 : i32
    %c0_i32_1 = arith.constant 0 : i32
    return %c0_i32, %c0_i32_0 : i32, i32
  }
  func.func @transform_7(%arg0: i32) -> (i32, i32) {
    %c0_i32 = arith.constant 0 : i32
    %c0_i32_0 = arith.constant 0 : i32
    %c0_i32_1 = arith.constant 0 : i32
    return %c0_i32, %c0_i32_0 : i32, i32
  }
  func.func @transform_8(%arg0: i32) -> (i32, i32) {
    %c0_i32 = arith.constant 0 : i32
    %c0_i32_0 = arith.constant 0 : i32
    %c0_i32_1 = arith.constant 0 : i32
    return %c0_i32, %c0_i32_0 : i32, i32
  }
  func.func @transform_9(%arg0: i32) -> (i32, i32) {
    %c0_i32 = arith.constant 0 : i32
    %c0_i32_0 = arith.constant 0 : i32
    return %arg0, %c0_i32 : i32, i32
  }
}

</mosaic_0001>

<bundles_post_ra>
// kernel: logistic_regression_forward.1
= control target key start
LH: loop header
LB: loop body
LE: loop exit
PB: predicated region body
PF: predicated region fallthrough
CT: control target
= control target key end

     0   :  { %v739_v2 = vmov 0   ;;  %vm73_vm0 = vcmask 261120   ;;  %s951_s0 = inlined_call_operand.vmem [shape: f32[16,32], index: 0, kind: input, shape index: {}]   ;;  %s952_s1 = inlined_call_operand.vmem [shape: bf16[32,256], index: 1, kind: input, shape index: {}]   ;;  %s953_s2 = inlined_call_operand.vmem [shape: f32[1,256], index: 2, kind: input, shape index: {}]   ;;  %s954_s3 = inlined_call_operand.vmem [shape: bf16[256,128], index: 3, kind: input, shape index: {}]   ;;  %s955_s4 = inlined_call_operand.vmem [shape: f32[1,128], index: 4, kind: input, shape index: {}]   ;;  %s956_s5 = inlined_call_operand.vmem [shape: bf16[128,128], index: 5, kind: input, shape index: {}]   ;;  %s957_s6 = inlined_call_operand.vmem [shape: f32[1,128], index: 6, kind: input, shape index: {}]   ;;  %s958_s7 = inlined_call_operand.vmem [shape: bf16[128,16], index: 7, kind: input, shape index: {}]   ;;  %s959_s8 = inlined_call_operand.vmem [shape: f32[1,16], index: 8, kind: input, shape index: {}]   ;;  %s960_s9 = inlined_call_operand.hbm [shape: f32[16,16], index: 9, kind: output, shape index: {}]  }
   0x1   :  { %v677_v0 = vld [vmem:[%s952_s1 + $0x4] ss:$8 sps:$4 sm:$0xff]   ;;  %v679_v1 = vld [vmem:[%s952_s1] ss:$8 sps:$4 sm:$0xff]   ;;  %109 = vmatprep.mubr.bf16.mxu0 %v739_v2  ;;  %v680_v3 = vld [vmem:[%s952_s1 + $0x14] ss:$8 sps:$4 sm:$0xff]  }
   0x2   :  { %77 = vmatprep.subr.bf16.mxu0 %v677_v0  ;;  %v682_v4 = vld [vmem:[%s952_s1 + $0x10] ss:$8 sps:$4 sm:$0xff]   ;;  %v34_v5 = vld [vmem:[%s951_s0] sm:$0xff]  ;;  %v35_v6 = vld [vmem:[%s951_s0 + $0x8] sm:$0xff] }
   0x3   :  { %78 = vmatpush1.bf16.msra.mxu0 %v679_v1  ;;  %v683_v7 = vld [vmem:[%s954_s3 + $0x40] sm:$0xff]   ;;  %v36_v9 = vpack.c.bf16 %v35_v6, %v34_v5  ;;  %v685_v10 = vld [vmem:[%s954_s3 + $0x48] sm:$0xff]   ;;  %v687_v12 = vld [vmem:[%s954_s3 + $0x50] sm:$0xff]  }
   0x4   :  { %79 = vmatprep.subr.bf16.mxu0 %v680_v3  ;;  %v684_v8 = vld [vmem:[%s954_s3] sm:$0xff]   ;;  %591 = vmatprep.subr.bf16.mxu1 %v683_v7  ;;  %v686_v11 = vld [vmem:[%s954_s3 + $0x8] sm:$0xff]   ;;  %v688_v13 = vld [vmem:[%s954_s3 + $0x10] sm:$0xff]  }
   0x5   :  { %592 = vmatpush3.bf16.msra.mxu1 %v684_v8  ;;  %v689_v14 = vld [vmem:[%s954_s3 + $0x58] sm:$0xff]   ;;  %v691_v16 = vld [vmem:[%s954_s3 + $0x60] sm:$0xff]   ;;  %v693_v18 = vld [vmem:[%s954_s3 + $0x68] sm:$0xff]  }
   0x6   :  { %593 = vmatprep.subr.bf16.mxu1 %v685_v10  ;;  %v690_v15 = vld [vmem:[%s954_s3 + $0x18] sm:$0xff]   ;;  %v692_v17 = vld [vmem:[%s954_s3 + $0x20] sm:$0xff]  }
   0x7   :  { %80 = vmatpush1.bf16.msra.mxu0 %v682_v4 }
   0x9   :  { %594 = vmatpush3.bf16.msra.mxu1 %v686_v11 }
   0xa   :  { %555 = vmatmul.mubr.msk.bf16.vlgmr.msra.gmra.mrb[0].mxu0 %vm73_vm0, %v36_v9  ;;  %595 = vmatprep.subr.bf16.mxu1 %v687_v12 }
   0xd   :  { %596 = vmatpush3.bf16.msra.mxu1 %v688_v13 }
   0xe   :  { %597 = vmatprep.subr.bf16.mxu1 %v689_v14 }
  0x11   :  { %598 = vmatpush3.bf16.msra.mxu1 %v690_v15 }
  0x12   :  { %599 = vmatprep.subr.bf16.mxu1 %v691_v16 }
  0x15   :  { %600 = vmatpush3.bf16.msra.mxu1 %v692_v17 }
  0x16   :  { %601 = vmatprep.subr.bf16.mxu1 %v693_v18 }
  0x17   :  { %14 = vsyncpa [#allocation3], 0  ;;  %v694_v19 = vld [vmem:[%s954_s3 + $0x28] sm:$0xff]   ;;  %v695_v20 = vld [vmem:[%s954_s3 + $0x70] sm:$0xff]   ;;  %v740_v25 = vmov 0.0   ;;  %v43_v30 = vlaneseq  ;;  %vm741_vm1 = vmmov 0  }
  0x18   :  { %v696_v21 = vld [vmem:[%s954_s3 + $0x30] sm:$0xff]   ;;  %v697_v22 = vld [vmem:[%s954_s3 + $0x78] sm:$0xff]   ;;  %v699_v24 = vld [vmem:[%s956_s5] sm:$0xff]   ;;  %631 = vmatprep.subr.bf16.mxu0 %v740_v25  ;;  %647 = vmatprep.mubr.msk.bf16.mxu0 %vm741_vm1, %v740_v25  ;;  %vm532_vm2 = vcmask 130048  }
  0x19   :  { %602 = vmatpush3.bf16.msra.mxu1 %v694_v19  ;;  %v698_v23 = vld [vmem:[%s954_s3 + $0x38] sm:$0xff]   ;;  %632 = vmatpush3.bf16.msra.mxu0 %v699_v24  ;;  %v700_v26 = vld [vmem:[%s956_s5 + $0x8] sm:$0xff]   ;;  %v701_v27 = vld [vmem:[%s956_s5 + $0x10] sm:$0xff]   ;;  %v44_v31 = vshrl.u32 %v43_v30, 7 }
  0x1a   :  { %603 = vmatprep.subr.bf16.mxu1 %v695_v20  ;;  %633 = vmatprep.subr.bf16.mxu0 %v740_v25  ;;  %v702_v28 = vld [vmem:[%s956_s5 + $0x18] sm:$0xff]   ;;  %v703_v29 = vld [vmem:[%s956_s5 + $0x20] sm:$0xff]   ;;  %v704_v51 = vld [vmem:[%s956_s5 + $0x28] sm:$0xff]  }
  0x1b   :  { %v45_v32 = vsub.s32 0, %v44_v31  ;;  %v41_v33 = vld [vmem:[%s953_s2] sm:$0x3]  ;;  %v49_v34 = vsub.s32 1, %v44_v31  ;;  %v705_v52 = vld [vmem:[%s956_s5 + $0x30] sm:$0xff]   ;;  %v706_v53 = vld [vmem:[%s956_s5 + $0x38] sm:$0xff]  }
  0x1c   :  { %v707_v54 = vld [vmem:[%s958_s7] sm:$0xff]   ;;  %v708_v55 = vld [vmem:[%s958_s7 + $0x8] sm:$0xff]   ;;  %v709_v56 = vld [vmem:[%s958_s7 + $0x10] sm:$0xff]  }
  0x1d   :  { %604 = vmatpush3.bf16.msra.mxu1 %v696_v21  ;;  %634 = vmatpush3.bf16.msra.mxu0 %v700_v26  ;;  %v46_v35 = vrot.slane %v41_v33, %v45_v32  ;;  %v50_v36 = vrot.slane %v41_v33, %v49_v34  ;;  %v710_v57 = vld [vmem:[%s958_s7 + $0x18] sm:$0xff]   ;;  %v711_v58 = vld [vmem:[%s958_s7 + $0x20] sm:$0xff]   ;;  %v712_v59 = vld [vmem:[%s958_s7 + $0x28] sm:$0xff]  }
  0x1e   :  { %605 = vmatprep.subr.bf16.mxu1 %v697_v22  ;;  %635 = vmatprep.subr.bf16.mxu0 %v740_v25  ;;  %v556_v61 = vld [vmem:[%s955_s4] ss:$0 sm:$0xff]  ;;  %v713_v8 = vld [vmem:[%s958_s7 + $0x30] sm:$0xff]   ;;  %v714_v9 = vld [vmem:[%s958_s7 + $0x38] sm:$0xff]   ;;  %s742_s7 = smov [#allocation2]  }
  0x1f   :  { %v573_v10 = vld [vmem:[%s957_s6] ss:$0 sm:$0xff]  ;;  %s540_s18 = sshll.u32 %s742_s7, 4  ;;  %s541_s18 = int_to_ptr.vmem [resolvable:$true] %s540_s18 }
  0x20   :  { %v582_v20 = vld [vmem:[%s959_s8] ss:$0 sm:$0xff]  ;;  %s715_s6 = scalar_lea.vmem %s541_s18, 256  ;;  %p720_p1 = scmp.lt.s32.totalorder %s541_s18, %s541_s18 }
  0x21   :  { %606 = vmatpush3.bf16.msra.mxu1 %v698_v23  ;;  %636 = vmatpush3.bf16.msra.mxu0 %v701_v27  ;;  %p716_p0 = scmp.ne.s32.totalorder %s541_s18, %s715_s6  ;;  %p721_p2 = scmp.lt.s32.totalorder %s715_s6, %s715_s6 }
  0x22   :  { %651 = vmatprep.subr.bf16.mxu1 %v740_v25  ;;  %637 = vmatprep.subr.bf16.mxu0 %v740_v25 }
  0x23   :  { %p722_p3 = por %p721_p2, %p720_p1 }
  0x25   :  { %638 = vmatpush3.bf16.msra.mxu0 %v702_v28  ;;  %p723_p4 = pnand %p722_p3, %p716_p0 }
  0x26   :  { %639 = vmatprep.subr.bf16.mxu0 %v740_v25 }
  0x29   :  { %640 = vmatpush3.bf16.msra.mxu0 %v703_v29 }
  0x2a   :  { %641 = vmatprep.subr.bf16.mxu0 %v740_v25 }
  0x2d   :  { %642 = vmatpush3.bf16.msra.mxu0 %v704_v51 }
  0x2e   :  { %643 = vmatprep.subr.bf16.mxu0 %v740_v25 }
  0x31   :  { %644 = vmatpush3.bf16.msra.mxu0 %v705_v52 }
  0x32   :  { %645 = vmatprep.subr.bf16.mxu0 %v740_v25 }
  0x35   :  { %646 = vmatpush3.bf16.msra.mxu0 %v706_v53 }
  0xdd   :  { %v111_v37 = vpop.f32.mrb[0].mxu0 }
  0xde   :  { %v112_v38 = vadd.f32 %v111_v37, %v46_v35  ;;  %v113_v39 = vpop.f32.mrb[1].mxu0 }
  0xdf   :  { %v114_v40 = vadd.f32 %v113_v39, %v50_v36  ;;  %v115_v41 = vpop.f32.mrb[2].mxu0 }
  0xe0   :  { %v116_v42 = vadd.f32 %v115_v41, %v46_v35  ;;  %v117_v43 = vpop.f32.mrb[3].mxu0  ;;  %v120_v45 = vmax.f32 %v112_v38, 0.0 }
  0xe1   :  { %v118_v44 = vadd.f32 %v117_v43, %v50_v36  ;;  %v121_v47 = vmax.f32 %v114_v40, 0.0 }
  0xe2   :  { %v122_v46 = vmax.f32 %v116_v42, 0.0 }
  0xe3   :  { %v123_v48 = vmax.f32 %v118_v44, 0.0 }
  0xe4   :  { %v124_v49 = vpack.c.bf16 %v122_v46, %v120_v45 }
  0xe5   :  { %v125_v50 = vpack.c.bf16 %v123_v48, %v121_v47 }
  0xe7   :  { %293 = vmatprep.mubr.bf16.mxu1 %v125_v50 }
  0xe8   :  { %294 = vmatmul.mubr.bf16.vlgmr.msra.gmra.mrb[0].mxu1 %v124_v49 }
  0xe9   :  { %667 = vmatprep.mubr.msk.bf16.mxu1 %vm741_vm1, %v740_v25  ;;  %652 = vmatpush3.bf16.msra.mxu1 %v707_v54 }
  0xea   :  { %653 = vmatprep.subr.bf16.mxu1 %v740_v25 }
  0xed   :  { %654 = vmatpush3.bf16.msra.mxu1 %v708_v55 }
  0xee   :  { %655 = vmatprep.subr.bf16.mxu1 %v740_v25 }
  0xf1   :  { %656 = vmatpush3.bf16.msra.mxu1 %v709_v56 }
  0xf2   :  { %657 = vmatprep.subr.bf16.mxu1 %v740_v25 }
  0xf5   :  { %658 = vmatpush3.bf16.msra.mxu1 %v710_v57 }
  0xf6   :  { %659 = vmatprep.subr.bf16.mxu1 %v740_v25 }
  0xf9   :  { %660 = vmatpush3.bf16.msra.mxu1 %v711_v58 }
  0xfa   :  { %661 = vmatprep.subr.bf16.mxu1 %v740_v25 }
  0xfd   :  { %662 = vmatpush3.bf16.msra.mxu1 %v712_v59 }
  0xfe   :  { %663 = vmatprep.subr.bf16.mxu1 %v740_v25 }
 0x101   :  { %664 = vmatpush3.bf16.msra.mxu1 %v713_v8 }
 0x102   :  { %665 = vmatprep.subr.bf16.mxu1 %v740_v25 }
 0x105   :  { %666 = vmatpush3.bf16.msra.mxu1 %v714_v9 }
 0x1bb   :  { %v607_v60 = vpop.f32.mrb[0].mxu1 }
 0x1bc   :  { %v608_v62 = vpop.f32.mrb[1].mxu1 }
 0x1bd   :  { %v609_v63 = vadd.f32 %v608_v62, %v607_v60  ;;  %v610_v0 = vpop.f32.mrb[2].mxu1 }
 0x1be   :  { %v611_v1 = vpop.f32.mrb[3].mxu1 }
 0x1bf   :  { %v296_v2 = vadd.f32 %v609_v63, %v556_v61  ;;  %v612_v3 = vadd.f32 %v611_v1, %v610_v0 }
 0x1c1   :  { %v299_v4 = vadd.f32 %v612_v3, %v556_v61  ;;  %v302_v5 = vmax.f32 %v296_v2, 0.0 }
 0x1c3   :  { %v303_v6 = vmax.f32 %v299_v4, 0.0 }
 0x1c5   :  { %v304_v7 = vpack.c.bf16 %v303_v6, %v302_v5 }
 0x1c7   :  { %648 = vmatmul.mubr.bf16.vlgmr.msra.gmra.mrb[4].mxu0 %v304_v7 }
 0x29a   :  { %v410_v11 = vpop.f32.mrb[4].mxu0 }
 0x29b   :  { %v411_v12 = vadd.f32 %v573_v10, %v410_v11  ;;  %v649_v13 = vpop.f32.mrb[5].mxu0 }
 0x29c   :  { %v413_v14 = vpop.f32.mrb[6].mxu0 }
 0x29d   :  { %v414_v15 = vadd.f32 %v573_v10, %v413_v14  ;;  %v650_v16 = vpop.f32.mrb[7].mxu0  ;;  %v417_v17 = vmax.f32 %v411_v12, 0.0 }
 0x29f   :  { %v418_v18 = vmax.f32 %v414_v15, 0.0 }
 0x2a1   :  { %v419_v19 = vpack.c.bf16 %v418_v18, %v417_v17 }
 0x2a3   :  { %668 = vmatmul.mubr.bf16.vlgmr.msra.gmra.mrb[4].mxu1 %v419_v19 }
 0x376   :  { %v525_v21 = vpop.f32.mrb[4].mxu1 }
 0x377   :  { %v526_v22 = vadd.f32 %v582_v20, %v525_v21  ;;  %v669_v23 = vpop.f32.mrb[5].mxu1 }
 0x378   :  { %v528_v24 = vpop.f32.mrb[6].mxu1 }
 0x379   :  { %533 = vst.msk [vmem:[#allocation2] sm:$0xff] %vm532_vm2, %v526_v22  ;;  %v529_v25 = vadd.f32 %v582_v20, %v528_v24  ;;  %v670_v26 = vpop.f32.mrb[7].mxu1 }
 0x37b   :  { %534 = vst.msk [vmem:[#allocation2 + $0x8] sm:$0xff] %vm532_vm2, %v529_v25 }
 0x37c   :  { %726 = shalt.err (!%p723_p4)
}
 0x37d   :  { %s727_s20 = scalar_lea.hbm %s960_s9, 256 }
 0x37e   :  { %p728_p5 = scmp.ne.s32.totalorder %s960_s9, %s727_s20  ;;  %p731_p6 = scmp.lt.u32.totalorder %s727_s20, %s960_s9 }
 0x380   :  { %p733_p7 = pnand %p731_p6, %p728_p5 }
 0x382   :  { %736 = shalt.err (!%p733_p7)
}
 0x383   :  { %s743_s1 = smov 128   ;;  %s744_s25 = smov 8  }
 0x384   :  { %546 = dma.vmem_to_hbm [thread:$0]  %s541_s18, 256, %s960_s9, [#allocation3], %s743_s1, %s743_s1, %s744_s25  }
 0x385   :  { %737 = dma.done.wait [#allocation3], 256  }
 0x386   :  { %738 = vsyncadd [#allocation3], 4294967040 }
 0x387   :  { %550 = vsyncpa [#allocation3], 1 }

</bundles_post_ra>
